<compile_context>
chip_gen: v7x
topology: tpu7x:2x2x1
jax: 0.10.0
libtpu: 0.0.40
codegen_flags: <defaults>
</compile_context>

<pallas_src>
import functools

import jax
import jax.numpy as jnp
from jax import lax
from jax.experimental import pallas as pl
from jax.experimental.pallas import tpu as pltpu

FOLD = 8                       # batch rows folded into the lane dimension
DEFAULT_BLOCK_ROWS = 512       # folded rows per batch block (= 4096 original rows)
_NEG = -1.0e30                 # finite "-inf": avoids (-inf) - (-inf) = NaN in stats


def _round_up(n, m):
    return (n + m - 1) // m * m


@functools.lru_cache(maxsize=1)
def _vmem_capacity_bytes():
    try:
        return int(pltpu.get_tpu_info().vmem_capacity_bytes)   # 128 MiB v5e/v6e, 64 MiB v7x
    except Exception:
        return 64 * 1024 * 1024                                # conservative default (v7x)


def _nn_kernel(x_ref, w1_ref, b1_ref, w2_ref, b2_ref, o_ref, *scratch,
               fold, out_cols, valid_rows, block_rows, mask_last, cache_logits):
    if cache_logits:
        m_sc, l_sc, cache_ref = scratch
    else:
        m_sc, l_sc = scratch

    phase = pl.program_id(0)      # 0: stream batch, accumulate stats; 1: normalize + store
    bi = pl.program_id(1)         # batch-block index
    nb = pl.num_programs(1)
    lanes = fold * out_cols       # lane width of the folded logits

    def fc(xv):
        h = jnp.dot(xv, w1_ref[...], preferred_element_type=jnp.float32) + b1_ref[...]
        h = jnp.maximum(h, 0.0)
        return jnp.dot(h, w2_ref[...], preferred_element_type=jnp.float32) + b2_ref[...]

    @pl.when(jnp.logical_and(phase == 0, bi == 0))
    def _init():
        m_sc[...] = jnp.full_like(m_sc, _NEG)
        l_sc[...] = jnp.zeros_like(l_sc)

    @pl.when(phase == 0)
    def _pass0():
        logits = fc(x_ref[...])
        if cache_logits:
            cache_ref[bi] = logits          # phase 1 reads these back from VMEM

        def accumulate(lg):
            m_old = m_sc[...]
            m_new = jnp.maximum(m_old, jnp.max(lg, axis=0, keepdims=True))
            l_sc[...] = (l_sc[...] * jnp.exp(m_old - m_new)
                         + jnp.sum(jnp.exp(lg - m_new), axis=0, keepdims=True))
            m_sc[...] = m_new

        if mask_last:
            # Only the final block can contain padded rows: gate the mask there.
            @pl.when(bi != nb - 1)
            def _bulk():
                accumulate(logits)

            @pl.when(bi == nb - 1)
            def _tail():
                frow = bi * block_rows + lax.broadcasted_iota(jnp.int32, logits.shape, 0)
                grp = lax.broadcasted_iota(jnp.int32, logits.shape, 1) // out_cols
                orig_row = frow * fold + grp
                accumulate(jnp.where(orig_row < valid_rows, logits, _NEG))
        else:
            accumulate(logits)

        @pl.when(bi == nb - 1)
        def _combine():
            # Fold the per-(group, column) stats into global per-column stats,
            # replicated across the `fold` lane groups, via XLU lane rolls
            # (cyclic shifts of out, 2*out, 4*out cover all 8 group offsets).
            m = m_sc[...]
            m_all = m
            shift = out_cols
            while shift < lanes:
                m_all = jnp.maximum(m_all, pltpu.roll(m_all, shift=shift, axis=1))
                shift *= 2
            l_all = l_sc[...] * jnp.exp(m - m_all)
            shift = out_cols
            while shift < lanes:
                l_all = l_all + pltpu.roll(l_all, shift=shift, axis=1)
                shift *= 2
            m_sc[...] = m_all
            l_sc[...] = l_all

    @pl.when(phase == 1)
    def _pass1():
        logits = cache_ref[bi] if cache_logits else fc(x_ref[...])
        # approx=False keeps results within the 1e-5 reference tolerance.
        inv = pl.reciprocal(l_sc[...], approx=False)
        o_ref[...] = (jnp.exp(logits - m_sc[...]) * inv).astype(o_ref.dtype)


def prepare_params(w1, b1, w2, b2, fold=FOLD):
    """One-time parameter preprocessing (hoisted out of the per-call path).

    PyTorch Linear stores W as (out, in).  Besides transposing, `fold` batch
    rows are folded into the lane dimension: x (B, in) is viewed as
    (B/fold, fold*in) and the weights become block-diagonal, so compute and
    output stores are lane-dense."""
    w1 = jnp.asarray(w1, jnp.float32)
    b1 = jnp.asarray(b1, jnp.float32)
    w2 = jnp.asarray(w2, jnp.float32)
    b2 = jnp.asarray(b2, jnp.float32)
    eye = jnp.eye(fold, dtype=jnp.float32)
    w1_f = jnp.kron(eye, w1.T)                    # (fold*in,  fold*hidden)
    w2_f = jnp.kron(eye, w2.T)                    # (fold*hid, fold*out)
    b1_f = jnp.tile(b1, fold).reshape(1, -1)      # (1, fold*hidden)
    b2_f = jnp.tile(b2, fold).reshape(1, -1)      # (1, fold*out)
    return w1_f, b1_f, w2_f, b2_f


@functools.partial(jax.jit, static_argnames=("block_rows", "force_recompute"))
def nn_forward(x, w1_f, b1_f, w2_f, b2_f, *, block_rows=DEFAULT_BLOCK_ROWS,
               force_recompute=False):
    """x: (B, input_size); folded params from prepare_params.
    Returns softmax(fc2(relu(fc1(x))), axis=0) with shape (B, output_size)."""
    x = x.astype(jnp.float32)
    B, in_cols = x.shape
    fold = FOLD
    in_fold = fold * in_cols
    assert w1_f.shape[0] == in_fold, "params were prepared for a different input size"
    hid_fold = w1_f.shape[1]
    out_fold = w2_f.shape[1]
    out_cols = out_fold // fold

    # ---- fold 8 batch rows into the lane dimension (free row-major reshape) ----
    b8 = _round_up(max(B, 1), fold)
    if b8 != B:
        # At most fold-1 rows of zero padding; only taken when B % 8 != 0.
        x = jnp.pad(x, ((0, b8 - B), (0, 0)))
    rows = b8 // fold                              # folded rows
    xf = x.reshape(rows, in_fold)

    # ---- batch tiling over folded rows ----
    if rows <= block_rows:
        bb, nb = rows, 1                           # single block: no block padding at all
    else:
        bb = _round_up(block_rows, 8)
        nb = pl.cdiv(rows, bb)
        padded = nb * bb
        if padded != rows:
            # TODO(synk): drop this (< one block) pad via Pallas boundary-block
            # clipping once verified on the target jax version; the in-kernel row
            # mask already keeps the stats correct for a partial last block.
            xf = jnp.pad(xf, ((0, padded - rows), (0, 0)))
        rows = padded
    mask_last = (rows * fold != B)

    # ---- VMEM budget: cache phase-0 logits when they fit (single x stream) ----
    lane = lambda n: _round_up(n, 128)
    sub = lambda n: _round_up(n, 8)
    vmem_cap = _vmem_capacity_bytes()
    cache_budget = min(vmem_cap // 3, 40 * 1024 * 1024)        # ~21 MiB v7x, 40 MiB v5e/v6e
    cache_bytes = nb * sub(bb) * lane(out_fold) * 4
    cache_logits = (not force_recompute) and (cache_bytes <= cache_budget)

    x_blk = sub(bb) * lane(in_fold) * 4
    o_blk = sub(bb) * lane(out_fold) * 4
    w_bytes = 4 * (sub(in_fold) * lane(hid_fold) + sub(hid_fold) * lane(out_fold)
                   + 8 * lane(hid_fold) + 8 * lane(out_fold))
    need = 2 * (x_blk + o_blk) + 2 * w_bytes + 2 * 8 * lane(out_fold) * 4
    if cache_logits:
        need += cache_bytes
    vmem_limit = int(min(max(32 * 1024 * 1024, need + 8 * 1024 * 1024),
                         vmem_cap - 16 * 1024 * 1024))

    kernel = functools.partial(
        _nn_kernel, fold=fold, out_cols=out_cols, valid_rows=B,
        block_rows=bb, mask_last=mask_last, cache_logits=cache_logits)

    if cache_logits:
        # Phase 1 normalizes from the VMEM cache: pin the x window on the last
        # phase-0 block so no x bytes are re-streamed from HBM during phase 1.
        x_map = lambda p, b: (b * (1 - p) + (nb - 1) * p, 0)
    else:
        x_map = lambda p, b: (b, 0)

    scratch = [pltpu.VMEM((1, out_fold), jnp.float32),   # running per-(group,col) max
               pltpu.VMEM((1, out_fold), jnp.float32)]   # running per-(group,col) sum
    if cache_logits:
        scratch.append(pltpu.VMEM((nb, bb, out_fold), jnp.float32))   # logits cache

    out_f = pl.pallas_call(
        kernel,
        out_shape=jax.ShapeDtypeStruct((rows, out_fold), jnp.float32),
        grid_spec=pltpu.PrefetchScalarGridSpec(
            num_scalar_prefetch=0,
            grid=(2, nb),                                             # (phase, batch block)
            in_specs=[
                pl.BlockSpec((bb, in_fold), x_map),                        # folded x tile
                pl.BlockSpec((in_fold, hid_fold), lambda p, b: (0, 0)),    # W1 (resident)
                pl.BlockSpec((1, hid_fold), lambda p, b: (0, 0)),          # b1 (resident)
                pl.BlockSpec((hid_fold, out_fold), lambda p, b: (0, 0)),   # W2 (resident)
                pl.BlockSpec((1, out_fold), lambda p, b: (0, 0)),          # b2 (resident)
            ],
            # Phase 0 never writes the output; pinning every phase-0 step to out
            # block 0 means each output block is written back to HBM exactly once,
            # right after its phase-1 store (writeback happens on index change).
            out_specs=pl.BlockSpec((bb, out_fold), lambda p, b: (b * p, 0)),
            scratch_shapes=scratch,
        ),
        compiler_params=pltpu.CompilerParams(
            # Both axes carry sequential deps (online dim=0 softmax; phase 1 after 0).
            # TODO(synk): v7x-only -- split the batch stream over the two TensorCores
            # (per-core partial (m,l) + tiny merge pass) to use both cores for large B.
            dimension_semantics=("arbitrary", "arbitrary"),
            vmem_limit_bytes=vmem_limit,
        ),
    )(xf, w1_f, b1_f, w2_f, b2_f)

    out = out_f.reshape(rows * fold, out_cols)     # free un-fold of the lane groups
    return out[:B] if rows * fold != B else out


def _init_linear(key, out_features, in_features):
    """Deterministic PyTorch-style init: U(-1/sqrt(fan_in), 1/sqrt(fan_in))."""
    kw, kb = jax.random.split(key)
    bound = 1.0 / jnp.sqrt(float(in_features))
    w = jax.random.uniform(kw, (out_features, in_features), jnp.float32, -bound, bound)
    b = jax.random.uniform(kb, (out_features,), jnp.float32, -bound, bound)
    return w, b


if __name__ == "__main__":
    batch, input_size, hidden_size, output_size = 8, 32, 32, 16

    key = jax.random.PRNGKey(0)
    kx, k1, k2 = jax.random.split(key, 3)

    x = jax.random.normal(kx, (batch, input_size), jnp.float32)
    w1, b1 = _init_linear(k1, hidden_size, input_size)
    w2, b2 = _init_linear(k2, output_size, hidden_size)

    params = prepare_params(w1, b1, w2, b2)   # hoisted, one-time preprocessing

    def reference(xv):
        h = jnp.maximum(xv @ w1.T + b1, 0.0)
        return jax.nn.softmax(h @ w2.T + b2, axis=0)

    # 1) Small batch: single block, no padding anywhere.
    out = jax.block_until_ready(nn_forward(x, *params))
    assert out.shape == (batch, output_size)
    assert jnp.allclose(out, reference(x), atol=1e-5, rtol=1e-5), "mismatch (B=8)"

    # 2) Fold-ragged batch (B=12 -> padded to 16): exercises in-kernel row masking.
    x2 = jax.random.normal(jax.random.PRNGKey(1), (12, input_size), jnp.float32)
    out2 = jax.block_until_ready(nn_forward(x2, *params))
    assert out2.shape == (12, output_size)
    assert jnp.allclose(out2, reference(x2), atol=1e-5, rtol=1e-5), "mismatch (B=12)"

    # 3) Multi-block batch (small block override): exercises the online dim=0
    #    softmax across blocks, last-block masking and the VMEM logits cache.
    x3 = jax.random.normal(jax.random.PRNGKey(2), (1000, input_size), jnp.float32)
    out3 = jax.block_until_ready(nn_forward(x3, *params, block_rows=32))
    assert out3.shape == (1000, output_size)
    assert jnp.allclose(out3, reference(x3), atol=1e-5, rtol=1e-5), "mismatch (B=1000)"

    # 4) Same batch through the recompute fallback (cache disabled).
    out4 = jax.block_until_ready(
        nn_forward(x3, *params, block_rows=32, force_recompute=True))
    assert jnp.allclose(out4, reference(x3), atol=1e-5, rtol=1e-5), "mismatch (recompute)"

    print("KERNEL_OK")
</pallas_src>

<mosaic_0001>
module attributes {stable_mosaic.version = 11 : i64} {
  func.func @_nn_kernel(%arg0: i32, %arg1: i32, %arg2: memref<1x256xf32, #tpu.memory_space<vmem>>, %arg3: memref<256x256xf32, #tpu.memory_space<vmem>>, %arg4: memref<1x256xf32, #tpu.memory_space<vmem>>, %arg5: memref<256x128xf32, #tpu.memory_space<vmem>>, %arg6: memref<1x128xf32, #tpu.memory_space<vmem>>, %arg7: memref<1x128xf32, #tpu.memory_space<vmem>>, %arg8: memref<1x128xf32, #tpu.memory_space<vmem>>, %arg9: memref<1x128xf32, #tpu.memory_space<vmem>>, %arg10: memref<1x1x128xf32, #tpu.memory_space<vmem>>) attributes {dimension_semantics = [#tpu.dimension_semantics<arbitrary>, #tpu.dimension_semantics<arbitrary>], iteration_bounds = array<i64: 2, 1>, scalar_prefetch = 0 : i64, scratch_operands = 3 : i64, tpu.core_type = #tpu.core_type<tc>, window_params = [{transform_indices = @transform_0, window_bounds = array<i64: 1, 256>}, {pipeline_mode = #tpu.pipeline_mode<synchronous>, transform_indices = @transform_1, window_bounds = array<i64: 256, 256>}, {pipeline_mode = #tpu.pipeline_mode<synchronous>, transform_indices = @transform_2, window_bounds = array<i64: 1, 256>}, {pipeline_mode = #tpu.pipeline_mode<synchronous>, transform_indices = @transform_3, window_bounds = array<i64: 256, 128>}, {pipeline_mode = #tpu.pipeline_mode<synchronous>, transform_indices = @transform_4, window_bounds = array<i64: 1, 128>}, {transform_indices = @transform_5, window_bounds = array<i64: 1, 128>}]} {
    %c0_i32 = arith.constant 0 : i32
    %0 = arith.cmpi eq, %arg0, %c0_i32 : i32
    %c0_i32_0 = arith.constant 0 : i32
    %1 = arith.cmpi eq, %arg1, %c0_i32_0 : i32
    %2 = arith.andi %0, %1 : i1
    %3 = arith.extui %2 : i1 to i32
    %c0_i32_1 = arith.constant 0 : i32
    %4 = arith.cmpi ne, %3, %c0_i32_1 : i32
    scf.if %4 {
      %cst = arith.constant -1.000000e+30 : f32
      %11 = vector.broadcast %cst : f32 to vector<1x128xf32>
      %c0 = arith.constant 0 : index
      %c0_5 = arith.constant 0 : index
      %12 = vector.load %arg8[%c0, %c0_5] : memref<1x128xf32, #tpu.memory_space<vmem>>, vector<1x128xf32>
      tpu.vector_store %arg8[%c0, %c0_5], %11 {strides = array<i32>} : memref<1x128xf32, #tpu.memory_space<vmem>>, vector<1x128xf32>,
      %cst_6 = arith.constant 0.000000e+00 : f32
      %13 = vector.broadcast %cst_6 : f32 to vector<1x128xf32>
      %c0_7 = arith.constant 0 : index
      %c0_8 = arith.constant 0 : index
      %14 = vector.load %arg9[%c0_7, %c0_8] : memref<1x128xf32, #tpu.memory_space<vmem>>, vector<1x128xf32>
      tpu.vector_store %arg9[%c0_7, %c0_8], %13 {strides = array<i32>} : memref<1x128xf32, #tpu.memory_space<vmem>>, vector<1x128xf32>,
    } else {
    }
    %c0_i32_2 = arith.constant 0 : i32
    %5 = arith.cmpi eq, %arg0, %c0_i32_2 : i32
    %6 = arith.extui %5 : i1 to i32
    %c0_i32_3 = arith.constant 0 : i32
    %7 = arith.cmpi ne, %6, %c0_i32_3 : i32
    scf.if %7 {
      %c0 = arith.constant 0 : index
      %c0_5 = arith.constant 0 : index
      %11 = vector.load %arg2[%c0, %c0_5] : memref<1x256xf32, #tpu.memory_space<vmem>>, vector<1x256xf32>
      %c0_6 = arith.constant 0 : index
      %c0_7 = arith.constant 0 : index
      %12 = vector.load %arg3[%c0_6, %c0_7] : memref<256x256xf32, #tpu.memory_space<vmem>>, vector<256x256xf32>
      %cst = arith.constant dense<0.000000e+00> : vector<1x256xf32>
      %13 = tpu.matmul %11, %12, %cst {dimension_numbers = #tpu.dot_dimension_numbers<[1], [0], [0], [1], [0, 0, 1, 1], [], []>} : vector<1x256xf32>, vector<256x256xf32>, vector<1x256xf32> -> vector<1x256xf32>
      %c0_8 = arith.constant 0 : index
      %c0_9 = arith.constant 0 : index
      %14 = vector.load %arg4[%c0_8, %c0_9] : memref<1x256xf32, #tpu.memory_space<vmem>>, vector<1x256xf32>
      %15 = arith.addf %13, %14 : vector<1x256xf32>
      %cst_10 = arith.constant 0.000000e+00 : f32
      %16 = vector.broadcast %cst_10 : f32 to vector<1x256xf32>
      %17 = arith.maximumf %15, %16 : vector<1x256xf32>
      %c0_11 = arith.constant 0 : index
      %c0_12 = arith.constant 0 : index
      %18 = vector.load %arg5[%c0_11, %c0_12] : memref<256x128xf32, #tpu.memory_space<vmem>>, vector<256x128xf32>
      %cst_13 = arith.constant dense<0.000000e+00> : vector<1x128xf32>
      %19 = tpu.matmul %17, %18, %cst_13 {dimension_numbers = #tpu.dot_dimension_numbers<[1], [0], [0], [1], [0, 0, 1, 1], [], []>} : vector<1x256xf32>, vector<256x128xf32>, vector<1x128xf32> -> vector<1x128xf32>
      %c0_14 = arith.constant 0 : index
      %c0_15 = arith.constant 0 : index
      %20 = vector.load %arg6[%c0_14, %c0_15] : memref<1x128xf32, #tpu.memory_space<vmem>>, vector<1x128xf32>
      %21 = arith.addf %19, %20 : vector<1x128xf32>
      %22 = arith.index_cast %arg1 : i32 to index
      %c0_16 = arith.constant 0 : index
      %c0_17 = arith.constant 0 : index
      %23 = vector.load %arg10[%22, %c0_16, %c0_17] : memref<1x1x128xf32, #tpu.memory_space<vmem>>, vector<1x1x128xf32>
      %24 = vector.shape_cast %23 : vector<1x1x128xf32> to vector<1x128xf32>
      %25 = vector.shape_cast %21 : vector<1x128xf32> to vector<1x1x128xf32>
      tpu.vector_store %arg10[%22, %c0_16, %c0_17], %25 {strides = array<i32>} : memref<1x1x128xf32, #tpu.memory_space<vmem>>, vector<1x1x128xf32>,
      %c0_18 = arith.constant 0 : index
      %c0_19 = arith.constant 0 : index
      %26 = vector.load %arg8[%c0_18, %c0_19] : memref<1x128xf32, #tpu.memory_space<vmem>>, vector<1x128xf32>
      %cst_20 = arith.constant dense<0xFF800000> : vector<128xf32>
      %27 = vector.multi_reduction <maximumf>, %21, %cst_20 [0] : vector<1x128xf32> to vector<128xf32>
      %28 = vector.shape_cast %27 : vector<128xf32> to vector<1x128xf32>
      %29 = arith.maximumf %26, %28 : vector<1x128xf32>
      %c0_21 = arith.constant 0 : index
      %c0_22 = arith.constant 0 : index
      %30 = vector.load %arg9[%c0_21, %c0_22] : memref<1x128xf32, #tpu.memory_space<vmem>>, vector<1x128xf32>
      %31 = arith.subf %26, %29 : vector<1x128xf32>
      %32 = math.exp %31 : vector<1x128xf32>
      %33 = arith.mulf %30, %32 : vector<1x128xf32>
      %34 = arith.subf %21, %29 : vector<1x128xf32>
      %35 = math.exp %34 : vector<1x128xf32>
      %cst_23 = arith.constant dense<0.000000e+00> : vector<128xf32>
      %36 = vector.multi_reduction <add>, %35, %cst_23 [0] : vector<1x128xf32> to vector<128xf32>
      %37 = vector.shape_cast %36 : vector<128xf32> to vector<1x128xf32>
      %38 = arith.addf %33, %37 : vector<1x128xf32>
      %c0_24 = arith.constant 0 : index
      %c0_25 = arith.constant 0 : index
      %39 = vector.load %arg9[%c0_24, %c0_25] : memref<1x128xf32, #tpu.memory_space<vmem>>, vector<1x128xf32>
      tpu.vector_store %arg9[%c0_24, %c0_25], %38 {strides = array<i32>} : memref<1x128xf32, #tpu.memory_space<vmem>>, vector<1x128xf32>,
      %c0_26 = arith.constant 0 : index
      %c0_27 = arith.constant 0 : index
      %40 = vector.load %arg8[%c0_26, %c0_27] : memref<1x128xf32, #tpu.memory_space<vmem>>, vector<1x128xf32>
      tpu.vector_store %arg8[%c0_26, %c0_27], %29 {strides = array<i32>} : memref<1x128xf32, #tpu.memory_space<vmem>>, vector<1x128xf32>,
      %c0_i32_28 = arith.constant 0 : i32
      %41 = arith.cmpi eq, %arg1, %c0_i32_28 : i32
      %42 = arith.extui %41 : i1 to i32
      %c0_i32_29 = arith.constant 0 : i32
      %43 = arith.cmpi ne, %42, %c0_i32_29 : i32
      scf.if %43 {
        %c0_30 = arith.constant 0 : index
        %c0_31 = arith.constant 0 : index
        %44 = vector.load %arg8[%c0_30, %c0_31] : memref<1x128xf32, #tpu.memory_space<vmem>>, vector<1x128xf32>
        %c16_i32 = arith.constant 16 : i32
        %45 = tpu.dynamic_rotate %44 by %c16_i32 dim 1 : vector<1x128xf32>, i32 -> vector<1x128xf32>
        %46 = arith.maximumf %44, %45 : vector<1x128xf32>
        %c32_i32 = arith.constant 32 : i32
        %47 = tpu.dynamic_rotate %46 by %c32_i32 dim 1 : vector<1x128xf32>, i32 -> vector<1x128xf32>
        %48 = arith.maximumf %46, %47 : vector<1x128xf32>
        %c64_i32 = arith.constant 64 : i32
        %49 = tpu.dynamic_rotate %48 by %c64_i32 dim 1 : vector<1x128xf32>, i32 -> vector<1x128xf32>
        %50 = arith.maximumf %48, %49 : vector<1x128xf32>
        %c0_32 = arith.constant 0 : index
        %c0_33 = arith.constant 0 : index
        %51 = vector.load %arg9[%c0_32, %c0_33] : memref<1x128xf32, #tpu.memory_space<vmem>>, vector<1x128xf32>
        %52 = arith.subf %44, %50 : vector<1x128xf32>
        %53 = math.exp %52 : vector<1x128xf32>
        %54 = arith.mulf %51, %53 : vector<1x128xf32>
        %c16_i32_34 = arith.constant 16 : i32
        %55 = tpu.dynamic_rotate %54 by %c16_i32_34 dim 1 : vector<1x128xf32>, i32 -> vector<1x128xf32>
        %56 = arith.addf %54, %55 : vector<1x128xf32>
        %c32_i32_35 = arith.constant 32 : i32
        %57 = tpu.dynamic_rotate %56 by %c32_i32_35 dim 1 : vector<1x128xf32>, i32 -> vector<1x128xf32>
        %58 = arith.addf %56, %57 : vector<1x128xf32>
        %c64_i32_36 = arith.constant 64 : i32
        %59 = tpu.dynamic_rotate %58 by %c64_i32_36 dim 1 : vector<1x128xf32>, i32 -> vector<1x128xf32>
        %60 = arith.addf %58, %59 : vector<1x128xf32>
        %c0_37 = arith.constant 0 : index
        %c0_38 = arith.constant 0 : index
        %61 = vector.load %arg8[%c0_37, %c0_38] : memref<1x128xf32, #tpu.memory_space<vmem>>, vector<1x128xf32>
        tpu.vector_store %arg8[%c0_37, %c0_38], %50 {strides = array<i32>} : memref<1x128xf32, #tpu.memory_space<vmem>>, vector<1x128xf32>,
        %c0_39 = arith.constant 0 : index
        %c0_40 = arith.constant 0 : index
        %62 = vector.load %arg9[%c0_39, %c0_40] : memref<1x128xf32, #tpu.memory_space<vmem>>, vector<1x128xf32>
        tpu.vector_store %arg9[%c0_39, %c0_40], %60 {strides = array<i32>} : memref<1x128xf32, #tpu.memory_space<vmem>>, vector<1x128xf32>,
      } else {
      }
    } else {
    }
    %c1_i32 = arith.constant 1 : i32
    %8 = arith.cmpi eq, %arg0, %c1_i32 : i32
    %9 = arith.extui %8 : i1 to i32
    %c0_i32_4 = arith.constant 0 : i32
    %10 = arith.cmpi ne, %9, %c0_i32_4 : i32
    scf.if %10 {
      %11 = arith.index_cast %arg1 : i32 to index
      %c0 = arith.constant 0 : index
      %c0_5 = arith.constant 0 : index
      %12 = vector.load %arg10[%11, %c0, %c0_5] : memref<1x1x128xf32, #tpu.memory_space<vmem>>, vector<1x1x128xf32>
      %13 = vector.shape_cast %12 : vector<1x1x128xf32> to vector<1x128xf32>
      %c0_6 = arith.constant 0 : index
      %c0_7 = arith.constant 0 : index
      %14 = vector.load %arg9[%c0_6, %c0_7] : memref<1x128xf32, #tpu.memory_space<vmem>>, vector<1x128xf32>
      %15 = tpu.reciprocal %14 : vector<1x128xf32> -> vector<1x128xf32>
      %c0_8 = arith.constant 0 : index
      %c0_9 = arith.constant 0 : index
      %16 = vector.load %arg8[%c0_8, %c0_9] : memref<1x128xf32, #tpu.memory_space<vmem>>, vector<1x128xf32>
      %17 = arith.subf %13, %16 : vector<1x128xf32>
      %18 = math.exp %17 : vector<1x128xf32>
      %19 = arith.mulf %18, %15 : vector<1x128xf32>
      %c0_10 = arith.constant 0 : index
      %c0_11 = arith.constant 0 : index
      %20 = vector.load %arg7[%c0_10, %c0_11] : memref<1x128xf32, #tpu.memory_space<vmem>>, vector<1x128xf32>
      tpu.vector_store %arg7[%c0_10, %c0_11], %19 {strides = array<i32>} : memref<1x128xf32, #tpu.memory_space<vmem>>, vector<1x128xf32>,
    } else {
    }
    return
  }
  func.func @transform_0(%arg0: i32, %arg1: i32) -> (i32, i32) {
    %c1_i32 = arith.constant 1 : i32
    %0 = arith.subi %c1_i32, %arg0 : i32
    %1 = arith.muli %arg1, %0 : i32
    %c0_i32 = arith.constant 0 : i32
    %2 = arith.muli %c0_i32, %arg0 : i32
    %3 = arith.addi %1, %2 : i32
    %c0_i32_0 = arith.constant 0 : i32
    %c0_i32_1 = arith.constant 0 : i32
    return %3, %c0_i32_0 : i32, i32
  }
  func.func @transform_1(%arg0: i32, %arg1: i32) -> (i32, i32) {
    %c0_i32 = arith.constant 0 : i32
    %c0_i32_0 = arith.constant 0 : i32
    %c0_i32_1 = arith.constant 0 : i32
    return %c0_i32, %c0_i32_0 : i32, i32
  }
  func.func @transform_2(%arg0: i32, %arg1: i32) -> (i32, i32) {
    %c0_i32 = arith.constant 0 : i32
    %c0_i32_0 = arith.constant 0 : i32
    %c0_i32_1 = arith.constant 0 : i32
    return %c0_i32, %c0_i32_0 : i32, i32
  }
  func.func @transform_3(%arg0: i32, %arg1: i32) -> (i32, i32) {
    %c0_i32 = arith.constant 0 : i32
    %c0_i32_0 = arith.constant 0 : i32
    %c0_i32_1 = arith.constant 0 : i32
    return %c0_i32, %c0_i32_0 : i32, i32
  }
  func.func @transform_4(%arg0: i32, %arg1: i32) -> (i32, i32) {
    %c0_i32 = arith.constant 0 : i32
    %c0_i32_0 = arith.constant 0 : i32
    %c0_i32_1 = arith.constant 0 : i32
    return %c0_i32, %c0_i32_0 : i32, i32
  }
  func.func @transform_5(%arg0: i32, %arg1: i32) -> (i32, i32) {
    %0 = arith.muli %arg1, %arg0 : i32
    %c0_i32 = arith.constant 0 : i32
    %c0_i32_0 = arith.constant 0 : i32
    return %0, %c0_i32 : i32, i32
  }
}

</mosaic_0001>

<bundles_post_ra>
// kernel: nn_forward.1
= control target key start
LH: loop header
LB: loop body
LE: loop exit
PB: predicated region body
PF: predicated region fallthrough
CT: control target
= control target key end

     0   :  { %10 = vsyncpa [#allocation6], 0  ;;  %s1170_s0 = inlined_call_operand.vmem [shape: f32[1,256], index: 0, kind: input, shape index: {}]   ;;  %s1171_s1 = inlined_call_operand.hbm [shape: f32[256,256], index: 1, kind: input, shape index: {}]   ;;  %s1172_s2 = inlined_call_operand.vmem [shape: f32[1,256], index: 2, kind: input, shape index: {}]   ;;  %s1173_s3 = inlined_call_operand.hbm [shape: f32[256,128], index: 3, kind: input, shape index: {}]   ;;  %s1174_s4 = inlined_call_operand.vmem [shape: f32[1,128], index: 4, kind: input, shape index: {}]   ;;  %s1175_s5 = inlined_call_operand.vmem [shape: f32[1,128], index: 5, kind: output, shape index: {}]  }
   0x1   :  { %11 = vsyncpa [#allocation8], 0  ;;  %s1038_s18 = smov 0   ;;  %s1040_s19 = smov 0  }
   0x2   :  { %s1042_s20 = smov 0  }
   0x3 LB: > { %s696_s21 = sadd.s32 4294967295, %s995_s20   ;;  %s29_s22 = sadd.s32 1, %s991_s19  ;;  %s995_s20 = sphi %s1042_s20, %s17_s20   ;;  %s991_s19 = sphi %s1040_s19, %s1185_s19   ;;  %s987_s18 = sphi %s1038_s18, %s1184_s18  }
   0x4   : > { %p31_p0 = scmp.ge.s32.totalorder %s29_s22, 2  ;;  %p698_p1 = scmp.ge.s32.totalorder %s995_s20, 1 }
   0x5   : > { %p176_p2 = scmp.lt.s32.totalorder %s995_s20, 3  ;;  %p1063_p4 = scmp.eq.s32.totalorder %s696_s21, 0 }
   0x6   : > { %s1187_s22 = smov (%p31_p0, %s29_s22), 0  ;;  %s997_s25 = smov [#allocation5]  }
   0x7   : > { %p1059_p3 = pnand %p698_p1, %p176_p2  ;;  %s188_s26 = sshll.u32 %s997_s25, 4  ;;  %s189_s26 = int_to_ptr.vmem [resolvable:$true] %s188_s26 }
   0x8   : > { %s1180_s24 = scalar_select %p1063_p4, 1, 0 }
   0x9   : > { %s1179_s23 = scalar_select %p1059_p3, 1, 0 }
   0xa   : > { %p853_p5 = pneg %p1059_p3  ;;  %s998_s28 = smov [#allocation7]  }
   0xb   : > { %s204_s29 = sshll.u32 %s998_s28, 4  ;;  %s909_s7 = scalar_lea.hbm %s1171_s1, 8192  ;;  %s1075_s29 = int_to_ptr.vmem [resolvable:$true] %s204_s29 }
   0xc   : > { %p1071_p6 = pnand %p1063_p4, %p853_p5  ;;  %p910_p7 = scmp.ne.s32.totalorder %s1171_s1, %s909_s7 }
   0xd   : > { %p916_p11 = scmp.lt.u32.totalorder %s909_s7, %s1171_s1 }
   0xe   : > { %p911_p8 = pneg %p1071_p6 }
  0x10   : > { %p912_p9 = pnand %p911_p8, %p910_p7 }
  0x12   : > { %p913_p10 = pneg %p912_p9 }
  0x14   : > { %p918_p12 = pnand %p916_p11, %p913_p10 }
  0x16   : > { %921 = shalt.err (!%p918_p12)
}
  0x17   : > { %s922_s12 = scalar_lea.vmem %s189_s26, 8192  ;;  %p930_p2 = scmp.lt.s32.totalorder %s189_s26, %s189_s26 }
  0x18   : > { %p923_p13 = scmp.ne.s32.totalorder %s189_s26, %s922_s12  ;;  %p931_p5 = scmp.lt.s32.totalorder %s922_s12, %s922_s12 }
  0x1a   : > { %p925_p0 = pnand %p923_p13, %p911_p8  ;;  %p932_p4 = por %p931_p5, %p930_p2 }
  0x1c   : > { %p926_p1 = pneg %p925_p0 }
  0x1e   : > { %p933_p3 = pnand %p932_p4, %p926_p1 }
  0x20   : > { %936 = shalt.err (!%p933_p3)
}
  0x21   : > { %s999_s13 = smov 256   ;;  %s1000_s14 = smov 16  }
  0x22   : > { %856 = dma.hbm_to_vmem [thread:$0]  (!%p1071_p6), %s1171_s1, 8192, %s189_s26, [#allocation6], %s999_s13, %s999_s13, %s1000_s14  }
  0x23   : > { %s937_s25 = scalar_lea.hbm %s1173_s3, 4096 }
  0x24   : > { %p938_p7 = scmp.ne.s32.totalorder %s1173_s3, %s937_s25  ;;  %p944_p9 = scmp.lt.u32.totalorder %s937_s25, %s1173_s3 }
  0x26   : > { %p940_p3 = pnand %p938_p7, %p911_p8 }
  0x28   : > { %p941_p4 = pneg %p940_p3 }
  0x2a   : > { %p946_p10 = pnand %p944_p9, %p941_p4 }
  0x2c   : > { %949 = shalt.err (!%p946_p10)
}
  0x2d   : > { %s950_s26 = scalar_lea.vmem %s1075_s29, 4096  ;;  %p958_p0 = scmp.lt.s32.totalorder %s1075_s29, %s1075_s29 }
  0x2e   : > { %p951_p11 = scmp.ne.s32.totalorder %s1075_s29, %s950_s26  ;;  %p959_p1 = scmp.lt.s32.totalorder %s950_s26, %s950_s26 }
  0x30   : > { %p953_p12 = pnand %p951_p11, %p911_p8  ;;  %p960_p2 = por %p959_p1, %p958_p0 }
  0x32   : > { %p954_p13 = pneg %p953_p12 }
  0x34   : > { %p961_p5 = pnand %p960_p2, %p954_p13 }
  0x36   : > { %964 = shalt.err (!%p961_p5)
}
  0x37   : > { %s1001_s8 = smov 128   ;;  %s1002_s9 = smov 8  }
  0x38   : > { %859 = dma.hbm_to_vmem [thread:$0]  (!%p1071_p6), %s1173_s3, 4096, %s1075_s29, [#allocation8], %s1001_s8, %s1001_s8, %s1002_s9  }
  0x39   : > { %p1182_p7 = scmp.ne.s32.totalorder %s1179_s23, 0 }
  0x3a   : > { %p1183_p8 = scmp.ne.s32.totalorder (!%p1182_p7), %s1180_s24, 0 }
  0x3b   : > { %234 = sbr.rel (%p1182_p7) target bundleno = 1333 (0x535), region = 40 }
  0x42   : > { %978 = dma.done.wait (%p1183_p8), [#allocation6], 8192  }
  0x43   : > { %980 = vsyncadd (%p1183_p8), [#allocation6], 4294959104 }
  0x44   : > { %982 = dma.done.wait (%p1183_p8), [#allocation8], 4096  }
  0x45   : > { %984 = vsyncadd (%p1183_p8), [#allocation8], 4294963200  ;;  %p279_p3 = scmp.eq.s32.totalorder %s987_s18, 0 }
  0x46   : > { %v1003_v0 = vmov (%p279_p3), -1e+30   ;;  %v1004_v1 = vmov (%p279_p3), 0.0  }
  0x47   : > { %284 = sbr.rel (!%p279_p3) target bundleno = 78 (0x4e), region = 52  ;;  %285 = vst [vmem:[#allocation2] sm:$0x1] (%p279_p3), %v1003_v0  ;;  %286 = vst [vmem:[#allocation3] sm:$0x1] (%p279_p3), %v1004_v1 }
  0x4e PF: > { %p707_p6 = scmp.ne.s32.totalorder %s987_s18, 0 }
  0x4f   : > { %v292_v2 = vld [vmem:[#allocation5 + $0x8] sm:$0xff] (!%p707_p6)  ;;  %v294_v3 = vld [vmem:[#allocation5 + $0x18] sm:$0xff] (!%p707_p6)  ;;  %v291_v4 = vld [vmem:[#allocation5] sm:$0xff] (!%p707_p6)  ;;  %v357_v27 = vlaneseq (!%p707_p6)  ;;  %s1005_s14 = smov (!%p707_p6), 16   ;;  %s1006_s15 = smov (!%p707_p6), 32  }
  0x50   : > { %289 = sbr.rel (%p707_p6) target bundleno = 1311 (0x51f), region = 56  ;;  %v749_v5 = vpack.c.bf16 (!%p707_p6), %v294_v3, %v292_v2  ;;  %v293_v6 = vld [vmem:[#allocation5 + $0x10] sm:$0xff] (!%p707_p6)  ;;  %v296_v7 = vld [vmem:[#allocation5 + $0x28] sm:$0xff] (!%p707_p6)  ;;  %v298_v8 = vld [vmem:[#allocation5 + $0x38] sm:$0xff] (!%p707_p6)  ;;  %s1007_s16 = smov (!%p707_p6), 64  }
  0x51   : > { %v751_v9 = vpack.c.bf16 (!%p707_p6), %v293_v6, %v291_v4  ;;  %v753_v10 = vpack.c.bf16 (!%p707_p6), %v298_v8, %v296_v7  ;;  %v295_v11 = vld [vmem:[#allocation5 + $0x20] sm:$0xff] (!%p707_p6)  ;;  %v297_v12 = vld [vmem:[#allocation5 + $0x30] sm:$0xff] (!%p707_p6)  ;;  %v300_v13 = vld [vmem:[#allocation5 + $0x48] sm:$0xff] (!%p707_p6)  ;;  %v1136_v34 = vshrl.u32 (!%p707_p6), %v357_v27, 7 }
  0x52   : > { %750 = vmatprep.subr.bf16.mxu0 (!%p707_p6), %v749_v5  ;;  %v302_v14 = vld [vmem:[#allocation5 + $0x58] sm:$0xff] (!%p707_p6)  ;;  %v755_v15 = vpack.c.bf16 (!%p707_p6), %v297_v12, %v295_v11  ;;  %v299_v17 = vld [vmem:[#allocation5 + $0x40] sm:$0xff] (!%p707_p6)  ;;  %v301_v18 = vld [vmem:[#allocation5 + $0x50] sm:$0xff] (!%p707_p6) }
  0x53   : > { %752 = vmatpush1.bf16.msra.mxu0 (!%p707_p6), %v751_v9  ;;  %v757_v16 = vpack.c.bf16 (!%p707_p6), %v302_v14, %v300_v13  ;;  %v304_v19 = vld [vmem:[#allocation5 + $0x68] sm:$0xff] (!%p707_p6)  ;;  %v306_v20 = vld [vmem:[#allocation5 + $0x78] sm:$0xff] (!%p707_p6)  ;;  %v759_v21 = vpack.c.bf16 (!%p707_p6), %v301_v18, %v299_v17  ;;  %v303_v23 = vld [vmem:[#allocation5 + $0x60] sm:$0xff] (!%p707_p6)  ;;  %v363_v41 = vsub.s32 (!%p707_p6), 1, %v1136_v34 }
  0x54   : > { %754 = vmatprep.subr.bf16.mxu0 (!%p707_p6), %v753_v10  ;;  %v761_v22 = vpack.c.bf16 (!%p707_p6), %v306_v20, %v304_v19  ;;  %v305_v24 = vld [vmem:[#allocation5 + $0x70] sm:$0xff] (!%p707_p6)  ;;  %v308_v25 = vld [vmem:[#allocation5 + $0x88] sm:$0xff] (!%p707_p6)  ;;  %v310_v26 = vld [vmem:[#allocation5 + $0x98] sm:$0xff] (!%p707_p6) }
  0x55   : > { %v763_v28 = vpack.c.bf16 (!%p707_p6), %v305_v24, %v303_v23  ;;  %v765_v29 = vpack.c.bf16 (!%p707_p6), %v310_v26, %v308_v25  ;;  %v307_v30 = vld [vmem:[#allocation5 + $0x80] sm:$0xff] (!%p707_p6)  ;;  %v309_v31 = vld [vmem:[#allocation5 + $0x90] sm:$0xff] (!%p707_p6)  ;;  %v312_v32 = vld [vmem:[#allocation5 + $0xa8] sm:$0xff] (!%p707_p6) }
  0x56   : > { %v314_v33 = vld [vmem:[#allocation5 + $0xb8] sm:$0xff] (!%p707_p6)  ;;  %v767_v35 = vpack.c.bf16 (!%p707_p6), %v309_v31, %v307_v30  ;;  %v311_v37 = vld [vmem:[#allocation5 + $0xa0] sm:$0xff] (!%p707_p6)  ;;  %v313_v38 = vld [vmem:[#allocation5 + $0xb0] sm:$0xff] (!%p707_p6) }
  0x57   : > { %756 = vmatpush1.bf16.msra.mxu0 %v755_v15  ;;  %v769_v36 = vpack.c.bf16 %v314_v33, %v312_v32  ;;  %v316_v39 = vld [vmem:[#allocation5 + $0xc8] sm:$0xff]  ;;  %v318_v40 = vld [vmem:[#allocation5 + $0xd8] sm:$0xff]  ;;  %v771_v42 = vpack.c.bf16 %v313_v38, %v311_v37  ;;  %v315_v43 = vld [vmem:[#allocation5 + $0xc0] sm:$0xff] }
  0x58   : > { %758 = vmatprep.subr.bf16.mxu0 %v757_v16  ;;  %v317_v44 = vld [vmem:[#allocation5 + $0xd0] sm:$0xff]  ;;  %v320_v45 = vld [vmem:[#allocation5 + $0xe8] sm:$0xff]  ;;  %v773_v46 = vpack.c.bf16 %v318_v40, %v316_v39  ;;  %v322_v47 = vld [vmem:[#allocation5 + $0xf8] sm:$0xff] }
  0x59   : > { %v1142_v48 = vld [vmem:[%s1170_s0] sm:$0x3]  ;;  %v467_v49 = vld [vmem:[#allocation7 + $0x80] sm:$0xff]  ;;  %v468_v51 = vld [vmem:[#allocation7 + $0x88] sm:$0xff]  ;;  %v775_v59 = vpack.c.bf16 %v317_v44, %v315_v43  ;;  %v777_v0 = vpack.c.bf16 %v322_v47, %v320_v45 }
  0x5a   : > { %v364_v50 = vrot.slane %v1142_v48, %v363_v41  ;;  %v451_v52 = vld [vmem:[#allocation7] sm:$0xff]  ;;  %v452_v53 = vld [vmem:[#allocation7 + $0x8] sm:$0xff]  ;;  %v813_v54 = vpack.c.bf16 %v468_v51, %v467_v49  ;;  %v469_v56 = vld [vmem:[#allocation7 + $0x90] sm:$0xff] }
  0x5b   : > { %760 = vmatpush1.bf16.msra.mxu0 %v759_v21  ;;  %v815_v55 = vpack.c.bf16 %v452_v53, %v451_v52  ;;  %v470_v57 = vld [vmem:[#allocation7 + $0x98] sm:$0xff]  ;;  %v453_v58 = vld [vmem:[#allocation7 + $0x10] sm:$0xff]  ;;  %v471_v62 = vld [vmem:[#allocation7 + $0xa0] sm:$0xff] }
  0x5c   : > { %762 = vmatprep.subr.bf16.mxu0 %v761_v22  ;;  %442 = vmatprep.mubr.f32.mxu0 %v364_v50  ;;  %v817_v60 = vpack.c.bf16 %v470_v57, %v469_v56  ;;  %v454_v61 = vld [vmem:[#allocation7 + $0x18] sm:$0xff]  ;;  %v472_v63 = vld [vmem:[#allocation7 + $0xa8] sm:$0xff]  ;;  %v319_v1 = vld [vmem:[#allocation5 + $0xe0] sm:$0xff] }
  0x5d   : > { %v321_v2 = vld [vmem:[#allocation5 + $0xf0] sm:$0xff]  ;;  %814 = vmatprep.subr.bf16.mxu1 %v813_v54  ;;  %v324_v3 = vld [vmem:[#allocation5 + $0x108] sm:$0xff]  ;;  %v326_v4 = vld [vmem:[#allocation5 + $0x118] sm:$0xff]  ;;  %v819_v5 = vpack.c.bf16 %v454_v61, %v453_v58  ;;  %v821_v6 = vpack.c.bf16 %v472_v63, %v471_v62 }
  0x5e   : > { %816 = vmatpush3.bf16.msra.mxu1 %v815_v55  ;;  %v455_v7 = vld [vmem:[#allocation7 + $0x20] sm:$0xff]  ;;  %v456_v8 = vld [vmem:[#allocation7 + $0x28] sm:$0xff]  ;;  %v779_v9 = vpack.c.bf16 %v321_v2, %v319_v1  ;;  %v473_v10 = vld [vmem:[#allocation7 + $0xb0] sm:$0xff]  ;;  %v781_v12 = vpack.c.bf16 %v326_v4, %v324_v3 }
  0x5f   : > { %764 = vmatpush1.bf16.msra.mxu0 %v763_v28  ;;  %818 = vmatprep.subr.bf16.mxu1 %v817_v60  ;;  %v474_v11 = vld [vmem:[#allocation7 + $0xb8] sm:$0xff]  ;;  %v323_v13 = vld [vmem:[#allocation5 + $0x100] sm:$0xff]  ;;  %v325_v14 = vld [vmem:[#allocation5 + $0x110] sm:$0xff]  ;;  %v823_v17 = vpack.c.bf16 %v456_v8, %v455_v7 }
  0x60   : > { %766 = vmatprep.subr.bf16.mxu0 %v765_v29  ;;  %v328_v15 = vld [vmem:[#allocation5 + $0x128] sm:$0xff]  ;;  %v330_v16 = vld [vmem:[#allocation5 + $0x138] sm:$0xff]  ;;  %v825_v18 = vpack.c.bf16 %v474_v11, %v473_v10  ;;  %v457_v19 = vld [vmem:[#allocation7 + $0x30] sm:$0xff]  ;;  %v783_v21 = vpack.c.bf16 %v325_v14, %v323_v13 }
  0x61   : > { %v458_v20 = vld [vmem:[#allocation7 + $0x38] sm:$0xff]  ;;  %v475_v22 = vld [vmem:[#allocation7 + $0xc0] sm:$0xff]  ;;  %v476_v23 = vld [vmem:[#allocation7 + $0xc8] sm:$0xff]  ;;  %v785_v24 = vpack.c.bf16 %v330_v16, %v328_v15  ;;  %v359_v16 = vsub.s32 0, %v1136_v34 }
  0x62   : > { %820 = vmatpush3.bf16.msra.mxu1 %v819_v5  ;;  %v327_v25 = vld [vmem:[#allocation5 + $0x120] sm:$0xff]  ;;  %v329_v26 = vld [vmem:[#allocation5 + $0x130] sm:$0xff]  ;;  %v332_v27 = vld [vmem:[#allocation5 + $0x148] sm:$0xff]  ;;  %v827_v29 = vpack.c.bf16 %v458_v20, %v457_v19  ;;  %v829_v30 = vpack.c.bf16 %v476_v23, %v475_v22 }
  0x63   : > { %768 = vmatpush1.bf16.msra.mxu0 %v767_v35  ;;  %822 = vmatprep.subr.bf16.mxu1 %v821_v6  ;;  %v334_v28 = vld [vmem:[#allocation5 + $0x158] sm:$0xff]  ;;  %v459_v31 = vld [vmem:[#allocation7 + $0x40] sm:$0xff]  ;;  %v460_v32 = vld [vmem:[#allocation7 + $0x48] sm:$0xff]  ;;  %v787_v33 = vpack.c.bf16 %v329_v26, %v327_v25 }
  0x64   : > { %770 = vmatprep.subr.bf16.mxu0 %v769_v36  ;;  %v477_v35 = vld [vmem:[#allocation7 + $0xd0] sm:$0xff]  ;;  %v478_v36 = vld [vmem:[#allocation7 + $0xd8] sm:$0xff]  ;;  %v789_v37 = vpack.c.bf16 %v334_v28, %v332_v27  ;;  %v331_v38 = vld [vmem:[#allocation5 + $0x140] sm:$0xff]  ;;  %v831_v43 = vpack.c.bf16 %v460_v32, %v459_v31 }
  0x65   : > { %v333_v39 = vld [vmem:[#allocation5 + $0x150] sm:$0xff]  ;;  %v336_v40 = vld [vmem:[#allocation5 + $0x168] sm:$0xff]  ;;  %v833_v44 = vpack.c.bf16 %v478_v36, %v477_v35  ;;  %v479_v49 = vld [vmem:[#allocation7 + $0xe0] sm:$0xff] }
  0x66   : > { %824 = vmatpush3.bf16.msra.mxu1 %v823_v17  ;;  %v461_v45 = vld [vmem:[#allocation7 + $0x50] sm:$0xff]  ;;  %v791_v47 = vpack.c.bf16 %v333_v39, %v331_v38  ;;  %v480_v50 = vld [vmem:[#allocation7 + $0xe8] sm:$0xff]  ;;  %v335_v52 = vld [vmem:[#allocation5 + $0x160] sm:$0xff] }
  0x67   : > { %772 = vmatpush1.bf16.msra.mxu0 %v771_v42  ;;  %826 = vmatprep.subr.bf16.mxu1 %v825_v18  ;;  %v338_v42 = vld [vmem:[#allocation5 + $0x178] sm:$0xff]  ;;  %v337_v53 = vld [vmem:[#allocation5 + $0x170] sm:$0xff]  ;;  %v340_v54 = vld [vmem:[#allocation5 + $0x188] sm:$0xff]  ;;  %v837_v57 = vpack.c.bf16 %v480_v50, %v479_v49  ;;  %v360_v18 = vrot.slane %v1142_v48, %v359_v16 }
  0x68   : > { %774 = vmatprep.subr.bf16.mxu0 %v773_v46  ;;  %v462_v46 = vld [vmem:[#allocation7 + $0x58] sm:$0xff]  ;;  %v793_v51 = vpack.c.bf16 %v338_v42, %v336_v40  ;;  %v795_v58 = vpack.c.bf16 %v337_v53, %v335_v52  ;;  %v339_v60 = vld [vmem:[#allocation5 + $0x180] sm:$0xff]  ;;  %v341_v61 = vld [vmem:[#allocation5 + $0x190] sm:$0xff] }
  0x69   : > { %v342_v55 = vld [vmem:[#allocation5 + $0x198] sm:$0xff]  ;;  %v835_v56 = vpack.c.bf16 %v462_v46, %v461_v45  ;;  %v344_v62 = vld [vmem:[#allocation5 + $0x1a8] sm:$0xff]  ;;  %v343_v2 = vld [vmem:[#allocation5 + $0x1a0] sm:$0xff] }
  0x6a   : > { %828 = vmatpush3.bf16.msra.mxu1 %v827_v29  ;;  %v346_v63 = vld [vmem:[#allocation5 + $0x1b8] sm:$0xff]  ;;  %v345_v3 = vld [vmem:[#allocation5 + $0x1b0] sm:$0xff]  ;;  %v348_v4 = vld [vmem:[#allocation5 + $0x1c8] sm:$0xff] }
  0x6b   : > { %776 = vmatpush1.bf16.msra.mxu0 %v775_v59  ;;  %830 = vmatprep.subr.bf16.mxu1 %v829_v30  ;;  %v797_v59 = vpack.c.bf16 %v342_v55, %v340_v54  ;;  %v801_v1 = vpack.c.bf16 %v346_v63, %v344_v62  ;;  %v350_v5 = vld [vmem:[#allocation5 + $0x1d8] sm:$0xff]  ;;  %v803_v6 = vpack.c.bf16 %v345_v3, %v343_v2  ;;  %v347_v8 = vld [vmem:[#allocation5 + $0x1c0] sm:$0xff]  ;;  %v352_v10 = vld [vmem:[#allocation5 + $0x1e8] sm:$0xff] }
  0x6c   : > { %778 = vmatprep.subr.bf16.mxu0 %v777_v0  ;;  %v799_v0 = vpack.c.bf16 %v341_v61, %v339_v60  ;;  %v805_v7 = vpack.c.bf16 %v350_v5, %v348_v4  ;;  %v354_v11 = vld [vmem:[#allocation5 + $0x1f8] sm:$0xff]  ;;  %v351_v14 = vld [vmem:[#allocation5 + $0x1e0] sm:$0xff]  ;;  %v353_v15 = vld [vmem:[#allocation5 + $0x1f0] sm:$0xff] }
  0x6d   : > { %v809_v13 = vpack.c.bf16 %v354_v11, %v352_v10  ;;  %v811_v17 = vpack.c.bf16 %v353_v15, %v351_v14  ;;  %v463_v19 = vld [vmem:[#allocation7 + $0x60] sm:$0xff]  ;;  %v464_v20 = vld [vmem:[#allocation7 + $0x68] sm:$0xff]  ;;  %v481_v22 = vld [vmem:[#allocation7 + $0xf0] sm:$0xff] }
  0x6e   : > { %832 = vmatpush3.bf16.msra.mxu1 %v831_v43  ;;  %v482_v23 = vld [vmem:[#allocation7 + $0xf8] sm:$0xff]  ;;  %v465_v25 = vld [vmem:[#allocation7 + $0x70] sm:$0xff] }
  0x6f   : > { %780 = vmatpush1.bf16.msra.mxu0 %v779_v9  ;;  %834 = vmatprep.subr.bf16.mxu1 %v833_v44  ;;  %v349_v9 = vld [vmem:[#allocation5 + $0x1d0] sm:$0xff]  ;;  %v466_v26 = vld [vmem:[#allocation7 + $0x78] sm:$0xff] }
  0x70   : > { %782 = vmatprep.subr.bf16.mxu0 %v781_v12  ;;  %v807_v12 = vpack.c.bf16 %v349_v9, %v347_v8  ;;  %v843_v27 = vpack.c.bf16 %v466_v26, %v465_v25  ;;  %v355_v28 = vld [vmem:[%s1172_s2] sm:$0x3] }
  0x71   : > { %v371_v29 = vrot.slane %v355_v28, %v359_v16  ;;  %v375_v48 = vrot.slane %v355_v28, %v363_v41  ;;  %v483_v38 = vld [vmem:[%s1174_s4] sm:$0x1]  ;;  %v558_v49 = vld [vmem:[#allocation3] sm:$0x1] }
  0x72   : > { %836 = vmatpush3.bf16.msra.mxu1 %v835_v56  ;;  %v556_v42 = vld [vmem:[#allocation2] sm:$0x1] }
  0x73   : > { %784 = vmatpush1.bf16.msra.mxu0 %v783_v21  ;;  %838 = vmatprep.subr.bf16.mxu1 %v837_v57  ;;  %v839_v21 = vpack.c.bf16 %v464_v20, %v463_v19 }
  0x74   : > { %786 = vmatprep.subr.bf16.mxu0 %v785_v24  ;;  %v841_v24 = vpack.c.bf16 %v482_v23, %v481_v22 }
  0x76   : > { %840 = vmatpush3.bf16.msra.mxu1 %v839_v21 }
  0x77   : > { %788 = vmatpush1.bf16.msra.mxu0 %v787_v33  ;;  %842 = vmatprep.subr.bf16.mxu1 %v841_v24 }
  0x78   : > { %790 = vmatprep.subr.bf16.mxu0 %v789_v37 }
  0x7a   : > { %844 = vmatpush3.bf16.msra.mxu1 %v843_v27 }
  0x7b   : > { %792 = vmatpush1.bf16.msra.mxu0 %v791_v47 }
  0x7c   : > { %794 = vmatprep.subr.bf16.mxu0 %v793_v51 }
  0x7f   : > { %796 = vmatpush1.bf16.msra.mxu0 %v795_v58 }
  0x80   : > { %798 = vmatprep.subr.bf16.mxu0 %v797_v59 }
  0x83   : > { %800 = vmatpush1.bf16.msra.mxu0 %v799_v0 }
  0x84   : > { %802 = vmatprep.subr.bf16.mxu0 %v801_v1 }
  0x87   : > { %804 = vmatpush1.bf16.msra.mxu0 %v803_v6 }
  0x88   : > { %806 = vmatprep.subr.bf16.mxu0 %v805_v7 }
  0x8b   : > { %808 = vmatpush1.bf16.msra.mxu0 %v807_v12 }
  0x8c   : > { %810 = vmatprep.subr.bf16.mxu0 %v809_v13 }
  0x8f   : > { %812 = vmatpush1.bf16.msra.mxu0 %v811_v17 }
  0x92   : > { %443 = vmatmul.mubr.f32.vlgmr.msra.gmra.mrb[0].mxu0 %v360_v18 }
 0x165   : > { %v444_v30 = vpop.f32.mrb[0].mxu0 }
 0x166   : > { %v445_v31 = vadd.f32 %v444_v30, %v371_v29  ;;  %v446_v32 = vpop.f32.mrb[1].mxu0 }
 0x167   : > { %v447_v33 = vadd.f32 %v446_v32, %v375_v48 }
 0x168   : > { %v449_v36 = vmax.f32 %v445_v31, 0.0 }
 0x169   : > { %v450_v35 = vmax.f32 %v447_v33, 0.0 }
 0x16b   : > { %548 = vmatprep.mubr.f32.mxu1 %v450_v35 }
 0x16c   : > { %549 = vmatmul.mubr.f32.vlgmr.msra.gmra.mrb[0].mxu1 %v449_v36 }
 0x23f   : > { %v746_v37 = vpop.f32.mrb[0].mxu1 }
 0x240   : > { %v747_v39 = vpop.f32.mrb[1].mxu1 }
 0x241   : > { %v748_v40 = vadd.f32 %v747_v39, %v746_v37 }
 0x243   : > { %v551_v43 = vadd.f32 %v748_v40, %v483_v38 }
 0x245   : > { %555 = vst [vmem:[#allocation4] sm:$0x1] %v551_v43  ;;  %v557_v34 = vmax.f32 %v556_v42, %v551_v43 }
 0x247   : > { %v559_v41 = vsub.f32 %v556_v42, %v557_v34  ;;  %v563_v44 = vsub.f32 %v551_v43, %v557_v34  ;;  %569 = vst [vmem:[#allocation2] sm:$0x1] %v557_v34 }
 0x249   : > { %v560_v45 = vmul.f32 1.442695, %v559_v41  ;;  %v564_v46 = vmul.f32 1.442695, %v563_v44 }
 0x24b   : > { %899 = vpow2.f32 %v560_v45 }
 0x24c   : > { %901 = vpow2.f32 %v564_v46 }
 0x24e   : > { %v573_v47 = vld [vmem:[#allocation2] sm:$0x1] }
 0x24f   : > { %574 = vrot.lane.b32.xlu0 %v573_v47, %s1005_s14 }
 0x255   : > { %v900_v50 = vpop.eup %899 }
 0x256   : > { %v562_v51 = vmul.f32 %v900_v50, %v558_v49  ;;  %v902_v52 = vpop.eup %901 }
 0x258   : > { %v567_v53 = vadd.f32 %v902_v52, %v562_v51 }
 0x25a   : > { %568 = vst [vmem:[#allocation3] sm:$0x1] %v567_v53 }
 0x261   : > { %v583_v63 = vld [vmem:[#allocation3] sm:$0x1] }
 0x2c1   : > { %v575_v54 = vpop.permute.xlu0 %574 }
 0x2c2   : > { %v576_v55 = vmax.f32 %v573_v47, %v575_v54 }
 0x2c4   : > { %577 = vrot.lane.b32.xlu0 %v576_v55, %s1006_s15 }
 0x336   : > { %v578_v56 = vpop.permute.xlu0 %577 }
 0x337   : > { %v579_v57 = vmax.f32 %v576_v55, %v578_v56 }
 0x339   : > { %580 = vrot.lane.b32.xlu1 %v579_v57, %s1007_s16 }
 0x3ab   : > { %v581_v58 = vpop.permute.xlu1 %580 }
 0x3ac   : > { %v582_v59 = vmax.f32 %v579_v57, %v581_v58 }
 0x3ae   : > { %v584_v60 = vsub.f32 %v573_v47, %v582_v59  ;;  %597 = vst [vmem:[#allocation2] sm:$0x1] %v582_v59 }
 0x3b0   : > { %v585_v61 = vmul.f32 1.442695, %v584_v60 }
 0x3b2   : > { %903 = vpow2.f32 %v585_v61 }
 0x3bc   : > { %v904_v62 = vpop.eup %903 }
 0x3bd   : > { %v587_v0 = vmul.f32 %v904_v62, %v583_v63 }
 0x3bf   : > { %588 = vrot.lane.b32.xlu1 %v587_v0, %s1005_s14 }
 0x431   : > { %v589_v1 = vpop.permute.xlu1 %588 }
 0x432   : > { %v590_v2 = vadd.f32 %v589_v1, %v587_v0 }
 0x434   : > { %591 = vrot.lane.b32.xlu0 %v590_v2, %s1006_s15 }
 0x4a6   : > { %v592_v3 = vpop.permute.xlu0 %591 }
 0x4a7   : > { %v593_v4 = vadd.f32 %v592_v3, %v590_v2 }
 0x4a9   : > { %594 = vrot.lane.b32.xlu1 %v593_v4, %s1007_s16 }
 0x51b   : > { %v595_v5 = vpop.permute.xlu1 %594 }
 0x51c   : > { %v596_v6 = vadd.f32 %v595_v5, %v593_v4 }
 0x51e   : > { %598 = vst [vmem:[#allocation3] sm:$0x1] %v596_v6 }
 0x51f PF: > { %p708_p4 = scmp.ne.s32.totalorder %s987_s18, 1 }
 0x520   : > { %v604_v7 = vld [vmem:[#allocation4] sm:$0x1] (!%p708_p4)  ;;  %v607_v9 = vld [vmem:[#allocation2] sm:$0x1] (!%p708_p4) }
 0x521   : > { %602 = sbr.rel (%p708_p4) target bundleno = 1333 (0x535), region = 64  ;;  %v608_v10 = vsub.f32 (!%p708_p4), %v604_v7, %v607_v9 }
 0x523   : > { %v609_v11 = vmul.f32 (!%p708_p4), 1.442695, %v608_v10 }
 0x525   : > { %v605_v8 = vld [vmem:[#allocation3] sm:$0x1] (!%p708_p4) }
 0x526   : > { %905 = vrcp.f32 (!%p708_p4), %v605_v8 }
 0x527   : > { %907 = vpow2.f32 (!%p708_p4), %v609_v11 }
 0x530   : > { %v906_v12 = vpop.eup %905 }
 0x531   : > { %v908_v13 = vpop.eup %907 }
 0x532   : > { %v611_v14 = vmul.f32 %v908_v13, %v906_v12 }
 0x534   : > { %612 = vst [vmem:[%s1175_s5] sm:$0x1] %v611_v14 }
 0x535 PF: > { %s17_s20 = sadd.s32 1, %s995_s20   ;;  %s1184_s18 = smov %s991_s19 }
 0x536   : > { %p14_p9 = scmp.ge.s32.totalorder %s17_s20, 4   ;;  %s1185_s19 = smov %s1187_s22 }
 0x538   :  { %16 = sbr.rel (!%p14_p9) target bundleno = 3 (0x3), region = 97 }
 0x53f   :  { %633 = vsyncpa [#allocation6], 1 }
 0x540   :  { %635 = vsyncpa [#allocation6 + $0x1], 1 }
 0x541   :  { %636 = vsyncpa [#allocation8], 1 }

</bundles_post_ra>
